<compile_context>
chip_gen: v7x
topology: tpu7x:2x2x1
jax: 0.10.0
libtpu: 0.0.40
codegen_flags: <defaults>
</compile_context>

<pallas_src>
import jax
import jax.numpy as jnp
from jax.experimental import pallas as pl
from jax.experimental.pallas import tpu as pltpu


# ----------------------------------------------------------------------------
# Fused kernel: encoder + GRU rollout + actor/critic head, single launch.
# ----------------------------------------------------------------------------
def sim2a_fused_kernel(nf_ref, roll_ref,                       # activations
                       w_enc_ref, b_enc_ref,                   # encoder
                       w_ih_ref, b_x_ref, w_hh_ref, b_hn_ref,  # GRU (packed)
                       w_head_h_ref, w_head_d_ref, b_head_ref, # head (packed)
                       logp_ref, value_ref):                   # outputs
    N = nf_ref.shape[0]
    TN = roll_ref.shape[0]
    H = w_hh_ref.shape[0]
    T = TN // N

    # ---- model_free_gn: linear node encoder + relu -------------------------
    node_embed = jnp.maximum(
        jnp.dot(nf_ref[...], w_enc_ref[...],
                preferred_element_type=jnp.float32) + b_enc_ref[...],
        0.0)                                                   # [N, D]

    # ---- rollout_encoder: GRUCell over T steps ------------------------------
    # PyTorch GRUCell semantics (x = concat([node_feature, reward])):
    #   r = sig(x Wir + bir + h Whr + bhr)
    #   z = sig(x Wiz + biz + h Whz + bhz)
    #   n = tanh(x Win + bin + r * (h Whn + bhn))
    #   h' = (1 - z) * n + z * h
    # Input projection fully hoisted: one [T*N, D+1] @ [D+1, 3H] matmul, with
    # bir|bhr, biz|bhz already folded into b_x (b_hn kept separate).
    gx = jnp.dot(roll_ref[...], w_ih_ref[...],
                 preferred_element_type=jnp.float32) + b_x_ref[...]   # [T*N, 3H]

    w_hh = w_hh_ref[...]                                       # [H, 3H]
    b_hn = b_hn_ref[...]                                       # [1, H]

    h = jnp.zeros((N, H), jnp.float32)
    for t in range(T):            # fully unrolled: T is small and static
        lo = t * N                # static, 8-aligned sublane offset
        gx_t = gx[lo:lo + N, :]                                # [N, 3H]
        gh = jnp.dot(h, w_hh, preferred_element_type=jnp.float32)  # [N, 3H]
        r = jax.nn.sigmoid(gx_t[:, 0:H] + gh[:, 0:H])
        z = jax.nn.sigmoid(gx_t[:, H:2 * H] + gh[:, H:2 * H])
        n = jnp.tanh(gx_t[:, 2 * H:3 * H] + r * (gh[:, 2 * H:3 * H] + b_hn))
        h = (1.0 - z) * n + z * h
    rollout_embed = h                                          # [N, H]

    # ---- sim2a head ---------------------------------------------------------
    # concat([rollout_embed, node_embed]) @ W^T == re @ W_h + ne @ W_d,
    # both heads packed into 2 lane columns (0 = actor, 1 = critic).
    head = (jnp.dot(rollout_embed, w_head_h_ref[...],
                    preferred_element_type=jnp.float32)
            + jnp.dot(node_embed, w_head_d_ref[...],
                      preferred_element_type=jnp.float32)
            + b_head_ref[...])                                 # [N, 2]

    logits = head[:, 0:1]                                      # [N, 1]
    m = jnp.max(logits, axis=0, keepdims=True)
    shifted = logits - m
    logp_ref[...] = shifted - jnp.log(
        jnp.sum(jnp.exp(shifted), axis=0, keepdims=True))      # log-softmax [N,1]

    v = head[:, 1:2]                                           # [N, 1]
    value_ref[...] = jnp.sum(v, axis=0, keepdims=True) * (1.0 / N)  # [1, 1]


# ----------------------------------------------------------------------------
# Parameters (lane-packed gate-major GRU layout, packed actor/critic head)
# ----------------------------------------------------------------------------
def init_params(key, nf_init_dim, node_embed_dim, rnn_hidden_dim):
    F, D, H = nf_init_dim, node_embed_dim, rnn_hidden_dim
    ks = jax.random.split(key, 8)
    s = 0.1
    return {
        # model_free_gn (linear encoder)
        "w_enc": s * jax.random.normal(ks[0], (F, D), jnp.float32),
        "b_enc": s * jax.random.normal(ks[1], (1, D), jnp.float32),
        # GRUCell, lane-packed gate-major columns (r|z|n), pre-transposed for
        # x @ W; input dim is D+1 (last input row = reward column weight).
        "w_ih": s * jax.random.normal(ks[2], (D + 1, 3 * H), jnp.float32),
        "b_i": s * jax.random.normal(ks[3], (1, 3 * H), jnp.float32),
        "w_hh": s * jax.random.normal(ks[4], (H, 3 * H), jnp.float32),
        "b_h": s * jax.random.normal(ks[5], (1, 3 * H), jnp.float32),
        # actor / critic heads over concat([rollout_embed, node_embed]),
        # split into H-part and D-part; column 0 = actor, column 1 = critic.
        "w_head_h": s * jax.random.normal(ks[6], (H, 2), jnp.float32),
        "w_head_d": s * jax.random.normal(ks[7], (D, 2), jnp.float32),
        "b_head": jnp.zeros((1, 2), jnp.float32),
    }


# ----------------------------------------------------------------------------
# Forward wrapper: one pallas_call + Categorical sampling glue
# ----------------------------------------------------------------------------
def sim2a_forward(nf_init, rollout_nf, rollout_rewards, params, key):
    T, N, D = rollout_nf.shape
    H = params["w_hh"].shape[0]

    # x_t = concat([node_feature_t, reward_t]); reward appended here so the
    # hoisted input projection absorbs it (no per-step reward handling).
    rew_col = jnp.broadcast_to(rollout_rewards.reshape(T, 1, 1), (T, N, 1))
    roll_aug = jnp.concatenate([rollout_nf, rew_col], axis=-1).reshape(T * N, D + 1)

    # Fold the loop-invariant hidden biases of the r/z gates into the input
    # bias (the n-gate hidden bias must stay inside r*(h@Whn + bhn)).
    b_x = params["b_i"].at[:, :2 * H].add(params["b_h"][:, :2 * H])   # [1, 3H]
    b_hn = params["b_h"][:, 2 * H:]                                   # [1, H]

    vmem = pl.BlockSpec(memory_space=pltpu.MemorySpace.VMEM)

    logp, value = pl.pallas_call(
        sim2a_fused_kernel,
        out_shape=(jax.ShapeDtypeStruct((N, 1), jnp.float32),
                   jax.ShapeDtypeStruct((1, 1), jnp.float32)),
        in_specs=[
            vmem,   # nf_init
            vmem,   # rollout node features + reward column, flattened
            vmem, vmem,                # encoder w, b
            vmem, vmem, vmem, vmem,    # GRU w_ih, b_x, w_hh, b_hn
            vmem, vmem, vmem,          # head w_h, w_d, bias
        ],
        out_specs=(vmem, vmem),
    )(nf_init, roll_aug,
      params["w_enc"], params["b_enc"],
      params["w_ih"], b_x, params["w_hh"], b_hn,
      params["w_head_h"], params["w_head_d"], params["b_head"])

    # glue: Categorical sample / log_prob (matches torch.distributions.Categorical)
    logp_vec = logp[:, 0]                              # already log-softmax
    nn_action = jax.random.categorical(key, logp_vec)
    logprob = logp_vec[nn_action]
    state_value = value[0]                             # shape (1,)
    return nn_action, logprob, state_value


if __name__ == "__main__":
    # shapes implied by the module: nf_init_dim=4, node_embed_dim=32,
    # rnn_hidden_dim=32, planning_horizon=5, N=8 graph nodes.
    N, F, D, H, T = 8, 4, 32, 32, 5

    key = jax.random.PRNGKey(0)
    k_nf, k_roll, k_rew, k_sample = jax.random.split(key, 4)

    nf_init = jax.random.normal(k_nf, (N, F), jnp.float32)
    # TODO(synk): rollout node features / rewards come from simulating an
    # Environment with the rollout policy; synthesized here.
    rollout_nf = jax.random.normal(k_roll, (T, N, D), jnp.float32)
    rollout_rewards = jax.random.normal(k_rew, (T, 1), jnp.float32)

    params = init_params(jax.random.PRNGKey(42), F, D, H)

    fwd = jax.jit(sim2a_forward)
    nn_action, logprob, state_value = fwd(
        nf_init, rollout_nf, rollout_rewards, params, k_sample)
    jax.block_until_ready((nn_action, logprob, state_value))
    print("KERNEL_OK")
</pallas_src>

<mosaic_0001>
module attributes {stable_mosaic.version = 11 : i64} {
  func.func @sim2a_fused_kernel(%arg0: memref<8x4xf32, #tpu.memory_space<vmem>>, %arg1: memref<40x33xf32, #tpu.memory_space<vmem>>, %arg2: memref<4x32xf32, #tpu.memory_space<vmem>>, %arg3: memref<1x32xf32, #tpu.memory_space<vmem>>, %arg4: memref<33x96xf32, #tpu.memory_space<vmem>>, %arg5: memref<1x96xf32, #tpu.memory_space<vmem>>, %arg6: memref<32x96xf32, #tpu.memory_space<vmem>>, %arg7: memref<1x32xf32, #tpu.memory_space<vmem>>, %arg8: memref<32x2xf32, #tpu.memory_space<vmem>>, %arg9: memref<32x2xf32, #tpu.memory_space<vmem>>, %arg10: memref<1x2xf32, #tpu.memory_space<vmem>>, %arg11: memref<8x1xf32, #tpu.memory_space<vmem>>, %arg12: memref<1x1xf32, #tpu.memory_space<vmem>>) attributes {dimension_semantics = [], scalar_prefetch = 0 : i64, scratch_operands = 0 : i64, tpu.core_type = #tpu.core_type<tc>} {
    %c0 = arith.constant 0 : index
    %c0_0 = arith.constant 0 : index
    %0 = vector.load %arg0[%c0, %c0_0] : memref<8x4xf32, #tpu.memory_space<vmem>>, vector<8x4xf32>
    %c0_1 = arith.constant 0 : index
    %c0_2 = arith.constant 0 : index
    %1 = vector.load %arg2[%c0_1, %c0_2] : memref<4x32xf32, #tpu.memory_space<vmem>>, vector<4x32xf32>
    %cst = arith.constant dense<0.000000e+00> : vector<8x32xf32>
    %2 = tpu.matmul %0, %1, %cst {dimension_numbers = #tpu.dot_dimension_numbers<[1], [0], [0], [1], [0, 0, 1, 1], [], []>} : vector<8x4xf32>, vector<4x32xf32>, vector<8x32xf32> -> vector<8x32xf32>
    %c0_3 = arith.constant 0 : index
    %c0_4 = arith.constant 0 : index
    %3 = vector.load %arg3[%c0_3, %c0_4] : memref<1x32xf32, #tpu.memory_space<vmem>>, vector<1x32xf32>
    %4 = vector.broadcast %3 : vector<1x32xf32> to vector<8x32xf32>
    %5 = arith.addf %2, %4 : vector<8x32xf32>
    %cst_5 = arith.constant 0.000000e+00 : f32
    %6 = vector.broadcast %cst_5 : f32 to vector<8x32xf32>
    %7 = arith.maximumf %5, %6 : vector<8x32xf32>
    %c0_6 = arith.constant 0 : index
    %c0_7 = arith.constant 0 : index
    %8 = vector.load %arg1[%c0_6, %c0_7] : memref<40x33xf32, #tpu.memory_space<vmem>>, vector<40x33xf32>
    %c0_8 = arith.constant 0 : index
    %c0_9 = arith.constant 0 : index
    %9 = vector.load %arg4[%c0_8, %c0_9] : memref<33x96xf32, #tpu.memory_space<vmem>>, vector<33x96xf32>
    %cst_10 = arith.constant dense<0.000000e+00> : vector<40x96xf32>
    %10 = tpu.matmul %8, %9, %cst_10 {dimension_numbers = #tpu.dot_dimension_numbers<[1], [0], [0], [1], [0, 0, 1, 1], [], []>} : vector<40x33xf32>, vector<33x96xf32>, vector<40x96xf32> -> vector<40x96xf32>
    %c0_11 = arith.constant 0 : index
    %c0_12 = arith.constant 0 : index
    %11 = vector.load %arg5[%c0_11, %c0_12] : memref<1x96xf32, #tpu.memory_space<vmem>>, vector<1x96xf32>
    %12 = vector.broadcast %11 : vector<1x96xf32> to vector<40x96xf32>
    %13 = arith.addf %10, %12 : vector<40x96xf32>
    %c0_13 = arith.constant 0 : index
    %c0_14 = arith.constant 0 : index
    %14 = vector.load %arg6[%c0_13, %c0_14] : memref<32x96xf32, #tpu.memory_space<vmem>>, vector<32x96xf32>
    %c0_15 = arith.constant 0 : index
    %c0_16 = arith.constant 0 : index
    %15 = vector.load %arg7[%c0_15, %c0_16] : memref<1x32xf32, #tpu.memory_space<vmem>>, vector<1x32xf32>
    %cst_17 = arith.constant 0.000000e+00 : f32
    %16 = vector.broadcast %cst_17 : f32 to vector<8x32xf32>
    %17 = vector.extract_strided_slice %13 {offsets = [0, 0], sizes = [8, 96], strides = [1, 1]} : vector<40x96xf32> to vector<8x96xf32>
    %cst_18 = arith.constant dense<0.000000e+00> : vector<8x96xf32>
    %18 = tpu.matmul %16, %14, %cst_18 {dimension_numbers = #tpu.dot_dimension_numbers<[1], [0], [0], [1], [0, 0, 1, 1], [], []>} : vector<8x32xf32>, vector<32x96xf32>, vector<8x96xf32> -> vector<8x96xf32>
    %19 = vector.extract_strided_slice %17 {offsets = [0, 0], sizes = [8, 32], strides = [1, 1]} : vector<8x96xf32> to vector<8x32xf32>
    %20 = vector.extract_strided_slice %18 {offsets = [0, 0], sizes = [8, 32], strides = [1, 1]} : vector<8x96xf32> to vector<8x32xf32>
    %21 = arith.addf %19, %20 : vector<8x32xf32>
    %22 = arith.negf %21 : vector<8x32xf32>
    %23 = math.exp %22 : vector<8x32xf32>
    %cst_19 = arith.constant 1.000000e+00 : f32
    %24 = vector.broadcast %cst_19 : f32 to vector<8x32xf32>
    %25 = arith.addf %24, %23 : vector<8x32xf32>
    %26 = arith.divf %24, %25 : vector<8x32xf32>
    %27 = vector.extract_strided_slice %17 {offsets = [0, 32], sizes = [8, 32], strides = [1, 1]} : vector<8x96xf32> to vector<8x32xf32>
    %28 = vector.extract_strided_slice %18 {offsets = [0, 32], sizes = [8, 32], strides = [1, 1]} : vector<8x96xf32> to vector<8x32xf32>
    %29 = arith.addf %27, %28 : vector<8x32xf32>
    %30 = arith.negf %29 : vector<8x32xf32>
    %31 = math.exp %30 : vector<8x32xf32>
    %cst_20 = arith.constant 1.000000e+00 : f32
    %32 = vector.broadcast %cst_20 : f32 to vector<8x32xf32>
    %33 = arith.addf %32, %31 : vector<8x32xf32>
    %34 = arith.divf %32, %33 : vector<8x32xf32>
    %35 = vector.extract_strided_slice %17 {offsets = [0, 64], sizes = [8, 32], strides = [1, 1]} : vector<8x96xf32> to vector<8x32xf32>
    %36 = vector.extract_strided_slice %18 {offsets = [0, 64], sizes = [8, 32], strides = [1, 1]} : vector<8x96xf32> to vector<8x32xf32>
    %37 = vector.broadcast %15 : vector<1x32xf32> to vector<8x32xf32>
    %38 = arith.addf %36, %37 : vector<8x32xf32>
    %39 = arith.mulf %26, %38 : vector<8x32xf32>
    %40 = arith.addf %35, %39 : vector<8x32xf32>
    %41 = math.tanh %40 : vector<8x32xf32>
    %cst_21 = arith.constant 1.000000e+00 : f32
    %42 = vector.broadcast %cst_21 : f32 to vector<8x32xf32>
    %43 = arith.subf %42, %34 : vector<8x32xf32>
    %44 = arith.mulf %43, %41 : vector<8x32xf32>
    %45 = arith.mulf %34, %16 : vector<8x32xf32>
    %46 = arith.addf %44, %45 : vector<8x32xf32>
    %47 = vector.extract_strided_slice %13 {offsets = [8, 0], sizes = [8, 96], strides = [1, 1]} : vector<40x96xf32> to vector<8x96xf32>
    %cst_22 = arith.constant dense<0.000000e+00> : vector<8x96xf32>
    %48 = tpu.matmul %46, %14, %cst_22 {dimension_numbers = #tpu.dot_dimension_numbers<[1], [0], [0], [1], [0, 0, 1, 1], [], []>} : vector<8x32xf32>, vector<32x96xf32>, vector<8x96xf32> -> vector<8x96xf32>
    %49 = vector.extract_strided_slice %47 {offsets = [0, 0], sizes = [8, 32], strides = [1, 1]} : vector<8x96xf32> to vector<8x32xf32>
    %50 = vector.extract_strided_slice %48 {offsets = [0, 0], sizes = [8, 32], strides = [1, 1]} : vector<8x96xf32> to vector<8x32xf32>
    %51 = arith.addf %49, %50 : vector<8x32xf32>
    %52 = arith.negf %51 : vector<8x32xf32>
    %53 = math.exp %52 : vector<8x32xf32>
    %cst_23 = arith.constant 1.000000e+00 : f32
    %54 = vector.broadcast %cst_23 : f32 to vector<8x32xf32>
    %55 = arith.addf %54, %53 : vector<8x32xf32>
    %56 = arith.divf %54, %55 : vector<8x32xf32>
    %57 = vector.extract_strided_slice %47 {offsets = [0, 32], sizes = [8, 32], strides = [1, 1]} : vector<8x96xf32> to vector<8x32xf32>
    %58 = vector.extract_strided_slice %48 {offsets = [0, 32], sizes = [8, 32], strides = [1, 1]} : vector<8x96xf32> to vector<8x32xf32>
    %59 = arith.addf %57, %58 : vector<8x32xf32>
    %60 = arith.negf %59 : vector<8x32xf32>
    %61 = math.exp %60 : vector<8x32xf32>
    %cst_24 = arith.constant 1.000000e+00 : f32
    %62 = vector.broadcast %cst_24 : f32 to vector<8x32xf32>
    %63 = arith.addf %62, %61 : vector<8x32xf32>
    %64 = arith.divf %62, %63 : vector<8x32xf32>
    %65 = vector.extract_strided_slice %47 {offsets = [0, 64], sizes = [8, 32], strides = [1, 1]} : vector<8x96xf32> to vector<8x32xf32>
    %66 = vector.extract_strided_slice %48 {offsets = [0, 64], sizes = [8, 32], strides = [1, 1]} : vector<8x96xf32> to vector<8x32xf32>
    %67 = vector.broadcast %15 : vector<1x32xf32> to vector<8x32xf32>
    %68 = arith.addf %66, %67 : vector<8x32xf32>
    %69 = arith.mulf %56, %68 : vector<8x32xf32>
    %70 = arith.addf %65, %69 : vector<8x32xf32>
    %71 = math.tanh %70 : vector<8x32xf32>
    %cst_25 = arith.constant 1.000000e+00 : f32
    %72 = vector.broadcast %cst_25 : f32 to vector<8x32xf32>
    %73 = arith.subf %72, %64 : vector<8x32xf32>
    %74 = arith.mulf %73, %71 : vector<8x32xf32>
    %75 = arith.mulf %64, %46 : vector<8x32xf32>
    %76 = arith.addf %74, %75 : vector<8x32xf32>
    %77 = vector.extract_strided_slice %13 {offsets = [16, 0], sizes = [8, 96], strides = [1, 1]} : vector<40x96xf32> to vector<8x96xf32>
    %cst_26 = arith.constant dense<0.000000e+00> : vector<8x96xf32>
    %78 = tpu.matmul %76, %14, %cst_26 {dimension_numbers = #tpu.dot_dimension_numbers<[1], [0], [0], [1], [0, 0, 1, 1], [], []>} : vector<8x32xf32>, vector<32x96xf32>, vector<8x96xf32> -> vector<8x96xf32>
    %79 = vector.extract_strided_slice %77 {offsets = [0, 0], sizes = [8, 32], strides = [1, 1]} : vector<8x96xf32> to vector<8x32xf32>
    %80 = vector.extract_strided_slice %78 {offsets = [0, 0], sizes = [8, 32], strides = [1, 1]} : vector<8x96xf32> to vector<8x32xf32>
    %81 = arith.addf %79, %80 : vector<8x32xf32>
    %82 = arith.negf %81 : vector<8x32xf32>
    %83 = math.exp %82 : vector<8x32xf32>
    %cst_27 = arith.constant 1.000000e+00 : f32
    %84 = vector.broadcast %cst_27 : f32 to vector<8x32xf32>
    %85 = arith.addf %84, %83 : vector<8x32xf32>
    %86 = arith.divf %84, %85 : vector<8x32xf32>
    %87 = vector.extract_strided_slice %77 {offsets = [0, 32], sizes = [8, 32], strides = [1, 1]} : vector<8x96xf32> to vector<8x32xf32>
    %88 = vector.extract_strided_slice %78 {offsets = [0, 32], sizes = [8, 32], strides = [1, 1]} : vector<8x96xf32> to vector<8x32xf32>
    %89 = arith.addf %87, %88 : vector<8x32xf32>
    %90 = arith.negf %89 : vector<8x32xf32>
    %91 = math.exp %90 : vector<8x32xf32>
    %cst_28 = arith.constant 1.000000e+00 : f32
    %92 = vector.broadcast %cst_28 : f32 to vector<8x32xf32>
    %93 = arith.addf %92, %91 : vector<8x32xf32>
    %94 = arith.divf %92, %93 : vector<8x32xf32>
    %95 = vector.extract_strided_slice %77 {offsets = [0, 64], sizes = [8, 32], strides = [1, 1]} : vector<8x96xf32> to vector<8x32xf32>
    %96 = vector.extract_strided_slice %78 {offsets = [0, 64], sizes = [8, 32], strides = [1, 1]} : vector<8x96xf32> to vector<8x32xf32>
    %97 = vector.broadcast %15 : vector<1x32xf32> to vector<8x32xf32>
    %98 = arith.addf %96, %97 : vector<8x32xf32>
    %99 = arith.mulf %86, %98 : vector<8x32xf32>
    %100 = arith.addf %95, %99 : vector<8x32xf32>
    %101 = math.tanh %100 : vector<8x32xf32>
    %cst_29 = arith.constant 1.000000e+00 : f32
    %102 = vector.broadcast %cst_29 : f32 to vector<8x32xf32>
    %103 = arith.subf %102, %94 : vector<8x32xf32>
    %104 = arith.mulf %103, %101 : vector<8x32xf32>
    %105 = arith.mulf %94, %76 : vector<8x32xf32>
    %106 = arith.addf %104, %105 : vector<8x32xf32>
    %107 = vector.extract_strided_slice %13 {offsets = [24, 0], sizes = [8, 96], strides = [1, 1]} : vector<40x96xf32> to vector<8x96xf32>
    %cst_30 = arith.constant dense<0.000000e+00> : vector<8x96xf32>
    %108 = tpu.matmul %106, %14, %cst_30 {dimension_numbers = #tpu.dot_dimension_numbers<[1], [0], [0], [1], [0, 0, 1, 1], [], []>} : vector<8x32xf32>, vector<32x96xf32>, vector<8x96xf32> -> vector<8x96xf32>
    %109 = vector.extract_strided_slice %107 {offsets = [0, 0], sizes = [8, 32], strides = [1, 1]} : vector<8x96xf32> to vector<8x32xf32>
    %110 = vector.extract_strided_slice %108 {offsets = [0, 0], sizes = [8, 32], strides = [1, 1]} : vector<8x96xf32> to vector<8x32xf32>
    %111 = arith.addf %109, %110 : vector<8x32xf32>
    %112 = arith.negf %111 : vector<8x32xf32>
    %113 = math.exp %112 : vector<8x32xf32>
    %cst_31 = arith.constant 1.000000e+00 : f32
    %114 = vector.broadcast %cst_31 : f32 to vector<8x32xf32>
    %115 = arith.addf %114, %113 : vector<8x32xf32>
    %116 = arith.divf %114, %115 : vector<8x32xf32>
    %117 = vector.extract_strided_slice %107 {offsets = [0, 32], sizes = [8, 32], strides = [1, 1]} : vector<8x96xf32> to vector<8x32xf32>
    %118 = vector.extract_strided_slice %108 {offsets = [0, 32], sizes = [8, 32], strides = [1, 1]} : vector<8x96xf32> to vector<8x32xf32>
    %119 = arith.addf %117, %118 : vector<8x32xf32>
    %120 = arith.negf %119 : vector<8x32xf32>
    %121 = math.exp %120 : vector<8x32xf32>
    %cst_32 = arith.constant 1.000000e+00 : f32
    %122 = vector.broadcast %cst_32 : f32 to vector<8x32xf32>
    %123 = arith.addf %122, %121 : vector<8x32xf32>
    %124 = arith.divf %122, %123 : vector<8x32xf32>
    %125 = vector.extract_strided_slice %107 {offsets = [0, 64], sizes = [8, 32], strides = [1, 1]} : vector<8x96xf32> to vector<8x32xf32>
    %126 = vector.extract_strided_slice %108 {offsets = [0, 64], sizes = [8, 32], strides = [1, 1]} : vector<8x96xf32> to vector<8x32xf32>
    %127 = vector.broadcast %15 : vector<1x32xf32> to vector<8x32xf32>
    %128 = arith.addf %126, %127 : vector<8x32xf32>
    %129 = arith.mulf %116, %128 : vector<8x32xf32>
    %130 = arith.addf %125, %129 : vector<8x32xf32>
    %131 = math.tanh %130 : vector<8x32xf32>
    %cst_33 = arith.constant 1.000000e+00 : f32
    %132 = vector.broadcast %cst_33 : f32 to vector<8x32xf32>
    %133 = arith.subf %132, %124 : vector<8x32xf32>
    %134 = arith.mulf %133, %131 : vector<8x32xf32>
    %135 = arith.mulf %124, %106 : vector<8x32xf32>
    %136 = arith.addf %134, %135 : vector<8x32xf32>
    %137 = vector.extract_strided_slice %13 {offsets = [32, 0], sizes = [8, 96], strides = [1, 1]} : vector<40x96xf32> to vector<8x96xf32>
    %cst_34 = arith.constant dense<0.000000e+00> : vector<8x96xf32>
    %138 = tpu.matmul %136, %14, %cst_34 {dimension_numbers = #tpu.dot_dimension_numbers<[1], [0], [0], [1], [0, 0, 1, 1], [], []>} : vector<8x32xf32>, vector<32x96xf32>, vector<8x96xf32> -> vector<8x96xf32>
    %139 = vector.extract_strided_slice %137 {offsets = [0, 0], sizes = [8, 32], strides = [1, 1]} : vector<8x96xf32> to vector<8x32xf32>
    %140 = vector.extract_strided_slice %138 {offsets = [0, 0], sizes = [8, 32], strides = [1, 1]} : vector<8x96xf32> to vector<8x32xf32>
    %141 = arith.addf %139, %140 : vector<8x32xf32>
    %142 = arith.negf %141 : vector<8x32xf32>
    %143 = math.exp %142 : vector<8x32xf32>
    %cst_35 = arith.constant 1.000000e+00 : f32
    %144 = vector.broadcast %cst_35 : f32 to vector<8x32xf32>
    %145 = arith.addf %144, %143 : vector<8x32xf32>
    %146 = arith.divf %144, %145 : vector<8x32xf32>
    %147 = vector.extract_strided_slice %137 {offsets = [0, 32], sizes = [8, 32], strides = [1, 1]} : vector<8x96xf32> to vector<8x32xf32>
    %148 = vector.extract_strided_slice %138 {offsets = [0, 32], sizes = [8, 32], strides = [1, 1]} : vector<8x96xf32> to vector<8x32xf32>
    %149 = arith.addf %147, %148 : vector<8x32xf32>
    %150 = arith.negf %149 : vector<8x32xf32>
    %151 = math.exp %150 : vector<8x32xf32>
    %cst_36 = arith.constant 1.000000e+00 : f32
    %152 = vector.broadcast %cst_36 : f32 to vector<8x32xf32>
    %153 = arith.addf %152, %151 : vector<8x32xf32>
    %154 = arith.divf %152, %153 : vector<8x32xf32>
    %155 = vector.extract_strided_slice %137 {offsets = [0, 64], sizes = [8, 32], strides = [1, 1]} : vector<8x96xf32> to vector<8x32xf32>
    %156 = vector.extract_strided_slice %138 {offsets = [0, 64], sizes = [8, 32], strides = [1, 1]} : vector<8x96xf32> to vector<8x32xf32>
    %157 = vector.broadcast %15 : vector<1x32xf32> to vector<8x32xf32>
    %158 = arith.addf %156, %157 : vector<8x32xf32>
    %159 = arith.mulf %146, %158 : vector<8x32xf32>
    %160 = arith.addf %155, %159 : vector<8x32xf32>
    %161 = math.tanh %160 : vector<8x32xf32>
    %cst_37 = arith.constant 1.000000e+00 : f32
    %162 = vector.broadcast %cst_37 : f32 to vector<8x32xf32>
    %163 = arith.subf %162, %154 : vector<8x32xf32>
    %164 = arith.mulf %163, %161 : vector<8x32xf32>
    %165 = arith.mulf %154, %136 : vector<8x32xf32>
    %166 = arith.addf %164, %165 : vector<8x32xf32>
    %c0_38 = arith.constant 0 : index
    %c0_39 = arith.constant 0 : index
    %167 = vector.load %arg8[%c0_38, %c0_39] : memref<32x2xf32, #tpu.memory_space<vmem>>, vector<32x2xf32>
    %cst_40 = arith.constant dense<0.000000e+00> : vector<8x2xf32>
    %168 = tpu.matmul %166, %167, %cst_40 {dimension_numbers = #tpu.dot_dimension_numbers<[1], [0], [0], [1], [0, 0, 1, 1], [], []>} : vector<8x32xf32>, vector<32x2xf32>, vector<8x2xf32> -> vector<8x2xf32>
    %c0_41 = arith.constant 0 : index
    %c0_42 = arith.constant 0 : index
    %169 = vector.load %arg9[%c0_41, %c0_42] : memref<32x2xf32, #tpu.memory_space<vmem>>, vector<32x2xf32>
    %cst_43 = arith.constant dense<0.000000e+00> : vector<8x2xf32>
    %170 = tpu.matmul %7, %169, %cst_43 {dimension_numbers = #tpu.dot_dimension_numbers<[1], [0], [0], [1], [0, 0, 1, 1], [], []>} : vector<8x32xf32>, vector<32x2xf32>, vector<8x2xf32> -> vector<8x2xf32>
    %171 = arith.addf %168, %170 : vector<8x2xf32>
    %c0_44 = arith.constant 0 : index
    %c0_45 = arith.constant 0 : index
    %172 = vector.load %arg10[%c0_44, %c0_45] : memref<1x2xf32, #tpu.memory_space<vmem>>, vector<1x2xf32>
    %173 = vector.broadcast %172 : vector<1x2xf32> to vector<8x2xf32>
    %174 = arith.addf %171, %173 : vector<8x2xf32>
    %175 = vector.extract_strided_slice %174 {offsets = [0, 0], sizes = [8, 1], strides = [1, 1]} : vector<8x2xf32> to vector<8x1xf32>
    %cst_46 = arith.constant dense<0xFF800000> : vector<1xf32>
    %176 = vector.multi_reduction <maximumf>, %175, %cst_46 [0] : vector<8x1xf32> to vector<1xf32>
    %177 = vector.shape_cast %176 : vector<1xf32> to vector<1x1xf32>
    %178 = vector.broadcast %177 : vector<1x1xf32> to vector<8x1xf32>
    %179 = arith.subf %175, %178 : vector<8x1xf32>
    %180 = math.exp %179 : vector<8x1xf32>
    %cst_47 = arith.constant dense<0.000000e+00> : vector<1xf32>
    %181 = vector.multi_reduction <add>, %180, %cst_47 [0] : vector<8x1xf32> to vector<1xf32>
    %182 = vector.shape_cast %181 : vector<1xf32> to vector<1x1xf32>
    %183 = math.log %182 : vector<1x1xf32>
    %184 = vector.broadcast %183 : vector<1x1xf32> to vector<8x1xf32>
    %185 = arith.subf %179, %184 : vector<8x1xf32>
    %c0_48 = arith.constant 0 : index
    %c0_49 = arith.constant 0 : index
    %186 = vector.load %arg11[%c0_48, %c0_49] : memref<8x1xf32, #tpu.memory_space<vmem>>, vector<8x1xf32>
    tpu.vector_store %arg11[%c0_48, %c0_49], %185 {strides = array<i32>} : memref<8x1xf32, #tpu.memory_space<vmem>>, vector<8x1xf32>,
    %187 = vector.extract_strided_slice %174 {offsets = [0, 1], sizes = [8, 1], strides = [1, 1]} : vector<8x2xf32> to vector<8x1xf32>
    %cst_50 = arith.constant dense<0.000000e+00> : vector<1xf32>
    %188 = vector.multi_reduction <add>, %187, %cst_50 [0] : vector<8x1xf32> to vector<1xf32>
    %189 = vector.shape_cast %188 : vector<1xf32> to vector<1x1xf32>
    %cst_51 = arith.constant 1.250000e-01 : f32
    %190 = vector.broadcast %cst_51 : f32 to vector<1x1xf32>
    %191 = arith.mulf %189, %190 : vector<1x1xf32>
    %c0_52 = arith.constant 0 : index
    %c0_53 = arith.constant 0 : index
    %192 = vector.load %arg12[%c0_52, %c0_53] : memref<1x1xf32, #tpu.memory_space<vmem>>, vector<1x1xf32>
    tpu.vector_store %arg12[%c0_52, %c0_53], %191 {strides = array<i32>} : memref<1x1xf32, #tpu.memory_space<vmem>>, vector<1x1xf32>,
    return
  }
}

</mosaic_0001>

<bundles_post_ra>
// kernel: sim2a_forward.1
= control target key start
LH: loop header
LB: loop body
LE: loop exit
PB: predicated region body
PF: predicated region fallthrough
CT: control target
= control target key end

     0   :  { %vm54_vm0 = vcmask 1043456   ;;  %v1287_v1 = vmov 0.0   ;;  %v1288_v2 = vmov 0.0|0.0   ;;  %vm50_vm1 = vcmask 31744   ;;  %s1572_s0 = inlined_call_operand.vmem [shape: f32[8,4], index: 0, kind: input, shape index: {}]   ;;  %s1573_s1 = inlined_call_operand.vmem [shape: f32[40,33], index: 1, kind: input, shape index: {}]   ;;  %s1574_s2 = inlined_call_operand.vmem [shape: f32[4,32], index: 2, kind: input, shape index: {}]   ;;  %s1575_s3 = inlined_call_operand.vmem [shape: f32[1,32], index: 3, kind: input, shape index: {}]   ;;  %s1576_s4 = inlined_call_operand.vmem [shape: f32[33,96], index: 4, kind: input, shape index: {}]   ;;  %s1577_s5 = inlined_call_operand.vmem [shape: f32[1,96], index: 5, kind: input, shape index: {}]   ;;  %s1578_s6 = inlined_call_operand.vmem [shape: f32[32,96], index: 6, kind: input, shape index: {}]   ;;  %s1579_s7 = inlined_call_operand.vmem [shape: f32[1,32], index: 7, kind: input, shape index: {}]   ;;  %s1580_s8 = inlined_call_operand.vmem [shape: f32[32,2], index: 8, kind: input, shape index: {}]   ;;  %s1581_s9 = inlined_call_operand.vmem [shape: f32[32,2], index: 9, kind: input, shape index: {}]   ;;  %s1582_s10 = inlined_call_operand.vmem [shape: f32[1,2], index: 10, kind: input, shape index: {}]   ;;  %s1583_s11 = inlined_call_operand.vmem [shape: f32[8,1], index: 11, kind: output, shape index: {0}]   ;;  %s1584_s12 = inlined_call_operand.hbm [shape: f32[1,1], index: 12, kind: output, shape index: {1}]  }
   0x1   :  { %v42_v0 = vld [vmem:[%s1574_s2] sm:$0xf]  ;;  %1067 = vmatprep.subr.mxu1 %v1287_v1  ;;  %1180 = vmatprep.subr.bf16.mxu0 %v1288_v2  ;;  %v257_v4 = vld [vmem:[%s1578_s6 + $0x8] sm:$0xff]  ;;  %vm1289_vm2 = vmmov 0   ;;  %v258_v9 = vld [vmem:[%s1578_s6 + $0x10] sm:$0xff] }
   0x2   :  { %v256_v3 = vld [vmem:[%s1578_s6] sm:$0xff]  ;;  %1068 = vmatpush3.msk.msra.mxu1 %vm54_vm0, %v42_v0  ;;  %1069 = vmatprep.mubr.msk.f32.mxu1 %vm1289_vm2, %v1287_v1  ;;  %v135_v8 = vld [vmem:[%s1576_s4 + $0x8] sm:$0xff]  ;;  %v259_v11 = vld [vmem:[%s1578_s6 + $0x18] sm:$0xff] }
   0x3   :  { %v41_v5 = vld [vmem:[%s1572_s0] sm:$0xff]  ;;  %v1375_v6 = vpack.c.bf16 %v257_v4, %v256_v3  ;;  %1174 = vmatprep.subr.bf16.mxu1 %v1288_v2  ;;  %v136_v12 = vld [vmem:[%s1576_s4 + $0x10] sm:$0xff]  ;;  %v137_v13 = vld [vmem:[%s1576_s4 + $0x18] sm:$0xff]  ;;  %v1397_v14 = vpack.c.bf16 %v259_v11, %v258_v9  ;;  %1105 = vmatprep.mubr.msk.f32.mxu0 %vm1289_vm2, %v1287_v1 }
   0x4   :  { %v134_v7 = vld [vmem:[%s1576_s4] sm:$0xff]  ;;  %1070 = vmatmul.mubr.msk.f32.vlgmr.msra.gmra.mrb[0].mxu1 %vm50_vm1, %v41_v5  ;;  %v1178_v16 = vpack.c.bf16 %v137_v13, %v136_v12 }
   0x5   :  { %v1175_v10 = vpack.c.bf16 %v135_v8, %v134_v7  ;;  %1182 = vmatpush3.bf16.msra.mxu0 %v1375_v6  ;;  %v1008_v15 = vld [vmem:[%s1579_s7] ss:$0 sm:$0xff] }
   0x6   :  { %1183 = vmatprep.subr.bf16.mxu0 %v1288_v2 }
   0x7   :  { %1176 = vmatpush3.bf16.msra.mxu1 %v1175_v10 }
   0x8   :  { %18 = vsyncpa [#allocation3], 0  ;;  %1177 = vmatprep.subr.bf16.mxu1 %v1288_v2  ;;  %1082 = vmatprep.mubr.msk.f32.mxu1 %vm1289_vm2, %v1287_v1  ;;  %s1290_s6 = smov 64   ;;  %v138_v17 = vld [vmem:[%s1576_s4 + $0x20] sm:$0x1]  ;;  %vm162_vm3 = vcmask 1040384  }
   0x9   :  { %347 = vrot.lane.b32.xlu0 %v1008_v15, %s1290_s6  ;;  %1185 = vmatpush3.bf16.msra.mxu0 %v1397_v14  ;;  %v129_v18 = vld [vmem:[%s1573_s1] sm:$0xff]  ;;  %vm146_vm4 = vcmask 269312   ;;  %v130_v38 = vld [vmem:[%s1573_s1 + $0x8] sm:$0xff]  ;;  %vm261_vm5 = vcmask 261120   ;;  %v131_v61 = vld [vmem:[%s1573_s1 + $0x10] sm:$0xff]  ;;  %vm942_vm6 = vcmask 7168  }
   0xa   :  { %1186 = vmatprep.subr.bf16.mxu0 %v1288_v2  ;;  %v1442_v27 = vld [vmem:[%s1577_s5] ss:$0 sm:$0xff]  ;;  %s1291_s5 = smov 96   ;;  %vm964_vm7 = vcmask 15368   ;;  %s1293_s2 = smov [#allocation2]   ;;  %vm977_vm8 = vcmask 0  }
   0xb   :  { %1179 = vmatpush3.bf16.msra.mxu1 %v1178_v16  ;;  %s987_s29 = sshll.u32 %s1293_s2, 4  ;;  %s988_s29 = int_to_ptr.vmem [resolvable:$true] %s987_s29 }
   0xc   :  { %1080 = vmatprep.subr.mxu1 %v1287_v1  ;;  %1106 = vmatmul.mubr.f32.vlgmr.msra.gmra.mrb[0].mxu0 %v1287_v1  ;;  %s1263_s30 = scalar_lea.vmem %s988_s29, 16  ;;  %s1267_s13 = scalar_lea.vmem %s988_s29, 32 }
   0xd   :  { %1188 = vmatpush3.bf16.msra.mxu0 %v1375_v6  ;;  %1116 = vmatprep.mubr.msk.f32.mxu0 %vm1289_vm2, %v1287_v1  ;;  %p1264_p0 = scmp.ne.s32.totalorder %s988_s29, %s1263_s30  ;;  %p1268_p1 = scmp.lt.s32.totalorder %s988_s29, %s988_s29 }
   0xe   :  { %1189 = vmatprep.subr.bf16.mxu0 %v1288_v2  ;;  %p1269_p2 = scmp.lt.s32.totalorder %s1267_s13, %s1263_s30 }
   0xf   :  { %1081 = vmatpush3.msk.msra.mxu1 %vm162_vm3, %v138_v17 }
  0x10   :  { %1083 = vmatmul.mubr.msk.f32.vlgmr.msra.gmra.mrb[2].mxu1 %vm146_vm4, %v129_v18  ;;  %1198 = vmatprep.subr.bf16.mxu1 %v1288_v2  ;;  %p1270_p3 = por %p1269_p2, %p1268_p1 }
  0x11   :  { %1085 = vmatprep.mubr.msk.f32.mxu1 %vm1289_vm2, %v1287_v1  ;;  %1200 = vmatpush3.bf16.msra.mxu1 %v1375_v6 }
  0x12   :  { %1191 = vmatpush3.bf16.msra.mxu0 %v1397_v14  ;;  %1201 = vmatprep.subr.bf16.mxu1 %v1288_v2  ;;  %p1271_p4 = pnand %p1270_p3, %p1264_p0 }
  0x13   :  { %1192 = vmatprep.subr.bf16.mxu0 %v1288_v2 }
  0x14   :  { %1086 = vmatmul.mubr.msk.f32.gmra.mrb[4].mxu1 %vm146_vm4, %v130_v38  ;;  %v783_v38 = vld [vmem:[%s1581_s9 + $0x8] sm:$0xff] }
  0x15   :  { %1203 = vmatpush3.bf16.msra.mxu1 %v1397_v14  ;;  %1088 = vmatprep.mubr.msk.f32.mxu1 %vm1289_vm2, %v1287_v1 }
  0x16   :  { %1210 = vmatprep.subr.bf16.mxu1 %v1288_v2 }
  0x18   :  { %1089 = vmatmul.mubr.msk.f32.gmra.mrb[6].mxu1 %vm146_vm4, %v131_v61 }
  0x19   :  { %1091 = vmatprep.mubr.msk.f32.mxu1 %vm1289_vm2, %v1287_v1 }
  0x7b   :  { %v1435_v21 = vpop.permute.xlu0 %347 }
  0xd7   :  { %v1433_v19 = vpop.f32.mrb[0].mxu1 }
  0xd8   :  { %v1071_v20 = vpop.f32.mrb[1].mxu1 }
  0xdf   :  { %v331_v22 = vpop.f32.mrb[0].mxu0 }
  0xe0   :  { %v350_v23 = vadd.f32 %v1435_v21, %v331_v22  ;;  %v1107_v24 = vpop.f32.mrb[1].mxu0 }
  0xe1   :  { %v132_v24 = vld [vmem:[%s1573_s1 + $0x18] sm:$0xff] }
  0xe2   :  { %352 = vrot.lane.b32.xlu0 %v350_v23, %s1290_s6  ;;  %1092 = vmatmul.mubr.msk.f32.gmra.mrb[8].mxu1 %vm146_vm4, %v132_v24 }
  0xe3   :  { %v232_v25 = vpop.f32.mrb[2].mxu1  ;;  %1094 = vmatprep.mubr.msk.f32.mxu1 %vm1289_vm2, %v1287_v1 }
  0xe4   :  { %v1084_v26 = vpop.f32.mrb[3].mxu1  ;;  %v233_v28 = vadd.f32 %v1442_v27, %v232_v25  ;;  %v133_v25 = vld [vmem:[%s1573_s1 + $0x20] sm:$0xff] }
  0xe6   :  { %v335_v29 = vadd.f32 %v331_v22, %v233_v28  ;;  %1095 = vmatmul.mubr.msk.f32.gmra.mrb[10].mxu1 %vm146_vm4, %v133_v25 }
  0xe7   :  { %v237_v45 = vpop.f32.mrb[4].mxu1  ;;  %1138 = vmatprep.mubr.msk.f32.mxu1 %vm1289_vm2, %v1287_v1 }
  0xe8   :  { %v1007_v30 = vmul.f32 -1.442695, %v335_v29  ;;  %v1087_v46 = vpop.f32.mrb[5].mxu1  ;;  %v238_v51 = vadd.f32 %v1442_v27, %v237_v45 }
  0xea   :  { %1229 = vpow2.f32 %v1007_v30 }
  0xeb   :  { %v242_v7 = vpop.f32.mrb[6].mxu1 }
  0xec   :  { %v1090_v8 = vpop.f32.mrb[7].mxu1  ;;  %v243_v13 = vadd.f32 %v1442_v27, %v242_v7 }
  0xf4   :  { %v1230_v31 = vpop.eup %1229 }
  0xf5   :  { %v339_v32 = vadd.f32 1.0, %v1230_v31 }
  0xf7   :  { %1231 = vrcp.f32 %v339_v32 }
 0x101   :  { %v1232_v33 = vpop.eup %1231 }
 0x102   :  { %v362_v40 = vsub.f32 1.0, %v1232_v33  ;;  %v368_v42 = vmul.f32 0.0, %v1232_v33 }
 0x154   :  { %v353_v34 = vpop.permute.xlu0 %352 }
 0x155   :  { %v355_v35 = vmul.f32 %v1232_v33, %v353_v34 }
 0x157   :  { %357 = vrot.lane.b32.xlu1 %v355_v35, %s1290_s6 }
 0x1b5   :  { %v247_v33 = vpop.f32.mrb[8].mxu1 }
 0x1b6   :  { %v1093_v34 = vpop.f32.mrb[9].mxu1 }
 0x1b9   :  { %v252_v35 = vpop.f32.mrb[10].mxu1 }
 0x1c9   :  { %v358_v36 = vpop.permute.xlu1 %357 }
 0x1ca   :  { %v360_v37 = vadd.f32 %v358_v36, %v233_v28  ;;  %v1096_v36 = vpop.f32.mrb[11].mxu1 }
 0x1cc   :  { %1233 = vtanh.f32 %v360_v37  ;;  %v782_v37 = vld [vmem:[%s1581_s9] sm:$0xff] }
 0x1d6   :  { %v1234_v39 = vpop.eup %1233 }
 0x1d7   :  { %364 = vrot.lane.b32.xlu1 %v1234_v39, %s1291_s5  ;;  %v1211_v39 = vpack.c.bf16 %v783_v38, %v782_v37 }
 0x249   :  { %v365_v41 = vpop.permute.xlu1 %364 }
 0x24a   :  { %v367_v43 = vmul.f32 %v365_v41, %v362_v40  ;;  %v784_v40 = vld [vmem:[%s1581_s9 + $0x10] sm:$0xff]  ;;  %v785_v41 = vld [vmem:[%s1581_s9 + $0x18] sm:$0xff] }
 0x24c   :  { %v369_v44 = vadd.f32 %v368_v42, %v367_v43  ;;  %v997_v42 = vld [vmem:[%s1575_s3] ss:$0 sm:$0xff] }
 0x24d   :  { %v125_v45 = vadd.f32 %v997_v42, %v1433_v19 }
 0x24e   :  { %371 = vrot.lane.b32.xlu0 %v369_v44, %s1291_s5 }
 0x24f   :  { %v128_v46 = vmax.f32 %v125_v45, 0.0 }
 0x2c0   :  { %v372_v47 = vpop.permute.xlu0 %371 }
 0x2c1   :  { %1117 = vmatmul.mubr.msk.f32.vlgmr.msra.gmra.mrb[2].mxu0 %vm261_vm5, %v372_v47 }
 0x2c2   :  { %1194 = vmatpush3.bf16.msra.mxu0 %v1375_v6  ;;  %1127 = vmatprep.mubr.msk.f32.mxu0 %vm1289_vm2, %v1287_v1 }
 0x2c3   :  { %1195 = vmatprep.subr.bf16.mxu0 %v1288_v2 }
 0x2c6   :  { %1197 = vmatpush3.bf16.msra.mxu0 %v1397_v14 }
 0x2c7   :  { %1204 = vmatprep.subr.bf16.mxu0 %v1288_v2 }
 0x394   :  { %v441_v48 = vpop.f32.mrb[2].mxu0 }
 0x395   :  { %v452_v49 = vadd.f32 %v441_v48, %v1435_v21  ;;  %v1118_v50 = vpop.f32.mrb[3].mxu0  ;;  %v445_v52 = vadd.f32 %v441_v48, %v238_v51 }
 0x397   :  { %454 = vrot.lane.b32.xlu1 %v452_v49, %s1290_s6  ;;  %v1010_v53 = vmul.f32 -1.442695, %v445_v52  ;;  %v248_v52 = vadd.f32 %v1442_v27, %v247_v33  ;;  %v1019_v33 = vld [vmem:[%s1582_s10] ss:$0 sm:$0xff]  ;;  %s1292_s10 = smov 127  }
 0x399   :  { %1235 = vpow2.f32 %v1010_v53 }
 0x3a3   :  { %v1236_v54 = vpop.eup %1235 }
 0x3a4   :  { %v449_v55 = vadd.f32 1.0, %v1236_v54 }
 0x3a6   :  { %1237 = vrcp.f32 %v449_v55 }
 0x3b0   :  { %v1238_v56 = vpop.eup %1237 }
 0x3b1   :  { %v464_v63 = vsub.f32 1.0, %v1238_v56  ;;  %v470_v3 = vmul.f32 %v1238_v56, %v369_v44  ;;  %v1214_v44 = vpack.c.bf16 %v785_v41, %v784_v40 }
 0x409   :  { %v455_v57 = vpop.permute.xlu1 %454 }
 0x40a   :  { %v457_v58 = vmul.f32 %v1238_v56, %v455_v57 }
 0x40c   :  { %459 = vrot.lane.b32.xlu0 %v457_v58, %s1290_s6 }
 0x47e   :  { %v460_v59 = vpop.permute.xlu0 %459 }
 0x47f   :  { %v462_v60 = vadd.f32 %v460_v59, %v238_v51 }
 0x481   :  { %1239 = vtanh.f32 %v462_v60 }
 0x48b   :  { %v1240_v62 = vpop.eup %1239 }
 0x48c   :  { %466 = vrot.lane.b32.xlu1 %v1240_v62, %s1291_s5 }
 0x4fe   :  { %v467_v0 = vpop.permute.xlu1 %466 }
 0x4ff   :  { %v469_v4 = vmul.f32 %v467_v0, %v464_v63 }
 0x501   :  { %v471_v5 = vadd.f32 %v470_v3, %v469_v4 }
 0x503   :  { %473 = vrot.lane.b32.xlu0 %v471_v5, %s1291_s5 }
 0x575   :  { %v474_v9 = vpop.permute.xlu0 %473 }
 0x576   :  { %1128 = vmatmul.mubr.msk.f32.vlgmr.msra.gmra.mrb[4].mxu0 %vm261_vm5, %v474_v9 }
 0x577   :  { %1206 = vmatpush3.bf16.msra.mxu0 %v1375_v6  ;;  %1149 = vmatprep.mubr.msk.f32.mxu0 %vm1289_vm2, %v1287_v1 }
 0x578   :  { %1207 = vmatprep.subr.bf16.mxu0 %v1288_v2 }
 0x57b   :  { %1209 = vmatpush3.bf16.msra.mxu0 %v1397_v14 }
 0x57c   :  { %1216 = vmatprep.subr.bf16.mxu0 %v1288_v2 }
 0x649   :  { %v543_v10 = vpop.f32.mrb[4].mxu0 }
 0x64a   :  { %v554_v11 = vadd.f32 %v543_v10, %v1435_v21  ;;  %v1129_v12 = vpop.f32.mrb[5].mxu0  ;;  %v547_v15 = vadd.f32 %v543_v10, %v243_v13  ;;  %v253_v10 = vadd.f32 %v1442_v27, %v252_v35  ;;  %v779_v27 = vld [vmem:[%s1580_s8 + $0x8] sm:$0xff] }
 0x64c   :  { %556 = vrot.lane.b32.xlu1 %v554_v11, %s1290_s6  ;;  %v1012_v16 = vmul.f32 -1.442695, %v547_v15 }
 0x64e   :  { %1241 = vpow2.f32 %v1012_v16 }
 0x658   :  { %v1242_v6 = vpop.eup %1241 }
 0x659   :  { %v551_v17 = vadd.f32 1.0, %v1242_v6 }
 0x65b   :  { %1243 = vrcp.f32 %v551_v17 }
 0x665   :  { %v1244_v18 = vpop.eup %1243 }
 0x666   :  { %v566_v28 = vsub.f32 1.0, %v1244_v18  ;;  %v572_v30 = vmul.f32 %v1244_v18, %v471_v5 }
 0x6be   :  { %v557_v20 = vpop.permute.xlu1 %556 }
 0x6bf   :  { %v559_v22 = vmul.f32 %v1244_v18, %v557_v20  ;;  %v780_v20 = vld [vmem:[%s1580_s8 + $0x10] sm:$0xff] }
 0x6c1   :  { %561 = vrot.lane.b32.xlu0 %v559_v22, %s1290_s6 }
 0x733   :  { %v562_v14 = vpop.permute.xlu0 %561 }
 0x734   :  { %v564_v23 = vadd.f32 %v562_v14, %v243_v13  ;;  %v781_v14 = vld [vmem:[%s1580_s8 + $0x18] sm:$0xff] }
 0x736   :  { %1245 = vtanh.f32 %v564_v23  ;;  %v1220_v23 = vpack.c.bf16 %v781_v14, %v780_v20 }
 0x740   :  { %v1246_v26 = vpop.eup %1245 }
 0x741   :  { %568 = vrot.lane.b32.xlu1 %v1246_v26, %s1291_s5 }
 0x7b3   :  { %v569_v29 = vpop.permute.xlu1 %568 }
 0x7b4   :  { %v571_v31 = vmul.f32 %v569_v29, %v566_v28 }
 0x7b6   :  { %v573_v32 = vadd.f32 %v572_v30, %v571_v31 }
 0x7b8   :  { %575 = vrot.lane.b32.xlu0 %v573_v32, %s1291_s5 }
 0x82a   :  { %v576_v43 = vpop.permute.xlu0 %575 }
 0x82b   :  { %1139 = vmatmul.mubr.msk.f32.vlgmr.msra.gmra.mrb[12].mxu1 %vm261_vm5, %v576_v43 }
 0x82c   :  { %1212 = vmatpush3.bf16.msra.mxu1 %v1211_v39  ;;  %1160 = vmatprep.mubr.msk.f32.mxu1 %vm1289_vm2, %v1287_v1 }
 0x82d   :  { %1213 = vmatprep.subr.bf16.mxu1 %v1288_v2 }
 0x830   :  { %1215 = vmatpush3.bf16.msra.mxu1 %v1214_v44 }
 0x833   :  { %1161 = vmatmul.mubr.msk.f32.vlgmr.msra.gmra.mrb[14].mxu1 %vm261_vm5, %v128_v46 }
 0x8fe   :  { %v645_v47 = vpop.f32.mrb[12].mxu1 }
 0x8ff   :  { %v656_v48 = vadd.f32 %v645_v47, %v1435_v21  ;;  %v1140_v49 = vpop.f32.mrb[13].mxu1  ;;  %v649_v53 = vadd.f32 %v645_v47, %v248_v52 }
 0x901   :  { %658 = vrot.lane.b32.xlu1 %v656_v48, %s1290_s6  ;;  %v1014_v54 = vmul.f32 -1.442695, %v649_v53 }
 0x903   :  { %1247 = vpow2.f32 %v1014_v54 }
 0x906   :  { %v1521_v50 = vpop.f32.mrb[14].mxu1 }
 0x907   :  { %v1162_v51 = vpop.f32.mrb[15].mxu1 }
 0x90d   :  { %v1248_v19 = vpop.eup %1247 }
 0x90e   :  { %v653_v55 = vadd.f32 1.0, %v1248_v19 }
 0x910   :  { %1249 = vrcp.f32 %v653_v55 }
 0x91a   :  { %v1250_v56 = vpop.eup %1249 }
 0x91b   :  { %v668_v62 = vsub.f32 1.0, %v1250_v56  ;;  %v674_v0 = vmul.f32 %v1250_v56, %v573_v32 }
 0x973   :  { %v659_v57 = vpop.permute.xlu1 %658 }
 0x974   :  { %v661_v58 = vmul.f32 %v1250_v56, %v659_v57 }
 0x976   :  { %663 = vrot.lane.b32.xlu0 %v661_v58, %s1290_s6 }
 0x9e8   :  { %v664_v59 = vpop.permute.xlu0 %663 }
 0x9e9   :  { %v666_v60 = vadd.f32 %v664_v59, %v248_v52 }
 0x9eb   :  { %1251 = vtanh.f32 %v666_v60 }
 0x9f5   :  { %v1252_v61 = vpop.eup %1251 }
 0x9f6   :  { %670 = vrot.lane.b32.xlu1 %v1252_v61, %s1291_s5 }
 0xa68   :  { %v671_v63 = vpop.permute.xlu1 %670 }
 0xa69   :  { %v673_v3 = vmul.f32 %v671_v63, %v668_v62 }
 0xa6b   :  { %v675_v4 = vadd.f32 %v674_v0, %v673_v3 }
 0xa6d   :  { %677 = vrot.lane.b32.xlu0 %v675_v4, %s1291_s5 }
 0xadf   :  { %v678_v5 = vpop.permute.xlu0 %677 }
 0xae0   :  { %1150 = vmatmul.mubr.msk.f32.vlgmr.msra.gmra.mrb[6].mxu0 %vm261_vm5, %v678_v5 }
 0xae1   :  { %1171 = vmatprep.mubr.msk.f32.mxu0 %vm1289_vm2, %v1287_v1 }
 0xbb3   :  { %v747_v7 = vpop.f32.mrb[6].mxu0 }
 0xbb4   :  { %v758_v8 = vadd.f32 %v747_v7, %v1435_v21  ;;  %v1151_v9 = vpop.f32.mrb[7].mxu0  ;;  %v751_v11 = vadd.f32 %v747_v7, %v253_v10  ;;  %v778_v21 = vld [vmem:[%s1580_s8] sm:$0xff] }
 0xbb5   :  { %v1217_v22 = vpack.c.bf16 %v779_v27, %v778_v21 }
 0xbb6   :  { %760 = vrot.lane.b32.xlu1 %v758_v8, %s1290_s6  ;;  %v1016_v12 = vmul.f32 -1.442695, %v751_v11 }
 0xbb7   :  { %1218 = vmatpush3.bf16.msra.mxu0 %v1217_v22 }
 0xbb8   :  { %1253 = vpow2.f32 %v1016_v12  ;;  %1219 = vmatprep.subr.bf16.mxu0 %v1288_v2 }
 0xbbb   :  { %1221 = vmatpush3.bf16.msra.mxu0 %v1220_v23 }
 0xbc2   :  { %v1254_v13 = vpop.eup %1253 }
 0xbc3   :  { %v755_v15 = vadd.f32 1.0, %v1254_v13 }
 0xbc5   :  { %1255 = vrcp.f32 %v755_v15 }
 0xbcf   :  { %v1256_v16 = vpop.eup %1255 }
 0xbd0   :  { %v770_v25 = vsub.f32 1.0, %v1256_v16  ;;  %v776_v28 = vmul.f32 %v1256_v16, %v675_v4 }
 0xc28   :  { %v761_v6 = vpop.permute.xlu1 %760 }
 0xc29   :  { %v763_v17 = vmul.f32 %v1256_v16, %v761_v6 }
 0xc2b   :  { %765 = vrot.lane.b32.xlu0 %v763_v17, %s1290_s6 }
 0xc9d   :  { %v766_v1 = vpop.permute.xlu0 %765 }
 0xc9e   :  { %v768_v18 = vadd.f32 %v766_v1, %v253_v10 }
 0xca0   :  { %1257 = vtanh.f32 %v768_v18 }
 0xcaa   :  { %v1258_v24 = vpop.eup %1257 }
 0xcab   :  { %772 = vrot.lane.b32.xlu1 %v1258_v24, %s1291_s5 }
 0xd1d   :  { %v773_v26 = vpop.permute.xlu1 %772 }
 0xd1e   :  { %v775_v29 = vmul.f32 %v773_v26, %v770_v25 }
 0xd20   :  { %v777_v30 = vadd.f32 %v776_v28, %v775_v29 }
 0xd22   :  { %860 = vrot.lane.b32.xlu0 %v777_v30, %s1291_s5 }
 0xd94   :  { %v861_v31 = vpop.permute.xlu0 %860 }
 0xd95   :  { %1172 = vmatmul.mubr.msk.f32.vlgmr.msra.gmra.mrb[8].mxu0 %vm261_vm5, %v861_v31 }
 0xe68   :  { %v930_v32 = vpop.f32.mrb[8].mxu0 }
 0xe69   :  { %v931_v2 = vadd.f32 %v930_v32, %v1521_v50  ;;  %v1173_v34 = vpop.f32.mrb[9].mxu0 }
 0xe6b   :  { %v941_v35 = vadd.f32 %v1019_v33, %v931_v2 }
 0xe6d   :  { %v943_v36 = vsel %vm942_vm6, %v941_v35, -inf  ;;  %v965_v37 = vsel %vm964_vm7, %v941_v35, 0.0 }
 0xe6e   :  { %v944_v38 = vrot.slane %v943_v36, 4  ;;  %v966_v39 = vrot.slane %v965_v37, 4 }
 0xe70   :  { %v945_v40 = vmax.f32 %v943_v36, %v944_v38  ;;  %v967_v41 = vadd.f32 %v966_v39, %v965_v37 }
 0xe72   :  { %v946_v42 = vrot.slane %v945_v40, 2  ;;  %v968_v43 = vrot.slane %v967_v41, 2 }
 0xe74   :  { %v947_v44 = vmax.f32 %v945_v40, %v946_v42  ;;  %v969_v45 = vadd.f32 %v968_v43, %v967_v41 }
 0xe76   :  { %v948_v46 = vrot.slane %v947_v44, 1  ;;  %v970_v47 = vrot.slane %v969_v45, 1 }
 0xe78   :  { %v949_v48 = vmax.f32 %v947_v44, %v948_v46  ;;  %v971_v49 = vadd.f32 %v970_v47, %v969_v45 }
 0xe7a   :  { %v950_v50 = vsub.f32 %v941_v35, %v949_v48  ;;  %v972_v51 = vmul.f32 0.125, %v971_v49 }
 0xe7c   :  { %v951_v52 = vmul.f32 1.442695, %v950_v50  ;;  %974 = vrot.lane.b32.xlu1 %v972_v51, %s1292_s10 }
 0xe7e   :  { %1259 = vpow2.f32 %v951_v52 }
 0xe88   :  { %v1260_v53 = vpop.eup %1259 }
 0xe89   :  { %v953_v54 = vsel %vm942_vm6, %v1260_v53, 0.0 }
 0xe8a   :  { %v954_v19 = vrot.slane %v953_v54, 4 }
 0xe8c   :  { %v955_v55 = vadd.f32 %v954_v19, %v953_v54 }
 0xe8e   :  { %v956_v56 = vrot.slane %v955_v55, 2 }
 0xe90   :  { %v957_v57 = vadd.f32 %v956_v56, %v955_v55 }
 0xe92   :  { %v958_v58 = vrot.slane %v957_v57, 1 }
 0xe94   :  { %v959_v59 = vadd.f32 %v958_v58, %v957_v57 }
 0xe96   :  { %1261 = vlog2.f32 %v959_v59 }
 0xea0   :  { %v1262_v60 = vpop.eup %1261 }
 0xea1   :  { %v961_v61 = vmul.f32 0.6931472, %v1262_v60 }
 0xea3   :  { %v962_v62 = vsub.f32 %v950_v50, %v961_v61 }
 0xea5   :  { %963 = vst.msk [vmem:[%s1583_s11] sm:$0xff] %vm942_vm6, %v962_v62 }
 0xeee   :  { %v975_v63 = vpop.permute.xlu1 %974 }
 0xeef   :  { %978 = vst.msk [vmem:[#allocation2] sm:$0x1] %vm977_vm8, %v975_v63 }
 0xef0   :  { %1274 = shalt.err (!%p1271_p4)
}
 0xef1   :  { %s1275_s1 = scalar_lea.hbm %s1584_s12, 16 }
 0xef2   :  { %p1276_p5 = scmp.ne.s32.totalorder %s1584_s12, %s1275_s1  ;;  %p1279_p6 = scmp.lt.u32.totalorder %s1275_s1, %s1584_s12 }
 0xef4   :  { %p1281_p7 = pnand %p1279_p6, %p1276_p5 }
 0xef6   :  { %1284 = shalt.err (!%p1281_p7)
}
 0xef7   :  { %990 = dma.vmem_to_hbm [thread:$0]  %s988_s29, 16, %s1584_s12, [#allocation3]  }
 0xef8   :  { %1285 = dma.done.wait [#allocation3], 16  }
 0xef9   :  { %1286 = vsyncadd [#allocation3], 4294967280 }
 0xefa   :  { %996 = vsyncpa [#allocation3], 1 }

</bundles_post_ra>
